<compile_context>
chip_gen: v6e
topology: v6e:2x2x1
jax: 0.10.0
libtpu: 0.0.40
codegen_flags: <defaults>
</compile_context>

<pallas_src>
import functools

import jax
import jax.numpy as jnp
from jax.experimental import pallas as pl
from jax.experimental.pallas import tpu as pltpu

_MIB = 1024 * 1024


def _vmem_budget_bytes():
    """Per-generation VMEM budget with headroom for compiler scratch/temps."""
    try:
        cap = int(pltpu.get_tpu_info().vmem_capacity_bytes)
    except Exception:
        cap = None
    if cap is None:
        return 48 * _MIB                       # conservative default: fits v7x
    if cap <= 64 * _MIB:                       # v7x-class (64 MiB physical)
        return max(cap - 12 * _MIB, 16 * _MIB)
    # v5e / v6e: 128 MiB physical, 32 MiB scoped default -> raise toward ~100 MiB.
    return min(cap - 28 * _MIB, 100 * _MIB)


# ----------------------------------------------------------------------------
# Fused kernel: one (B, HW, C) block per grid step does pool+gate+scale.
# ----------------------------------------------------------------------------
def _se_fused_kernel(x_ref, w1t_ref, b1_ref, w2t_ref, b2_ref, o_ref):
    x = x_ref[...]                                               # (B, HW, C)
    # f32-accumulated global average pool; no persistent f32 copy of the block.
    pooled = jnp.mean(x, axis=1, dtype=jnp.float32)              # (B, C)
    h = jnp.dot(pooled, w1t_ref[...],
                preferred_element_type=jnp.float32) + b1_ref[...]  # (B, mid)
    h = jnp.maximum(h, 0.0)
    s = jnp.dot(h, w2t_ref[...],
                preferred_element_type=jnp.float32) + b2_ref[...]  # (B, C)
    s = jax.nn.sigmoid(s)                                          # EUP
    # Channel-wise scale in the storage dtype; lane-dense (C-wide) store.
    o_ref[...] = x * s[:, None, :].astype(x.dtype)


# ----------------------------------------------------------------------------
# Split path for large HW*C slabs: gate kernel (per-sample scale) + scale kernel.
# ----------------------------------------------------------------------------
def _se_gate_kernel(x_ref, w1t_ref, b1_ref, w2t_ref, b2_ref, s_ref, acc_ref, *,
                    inv_hw):
    hi = pl.program_id(1)

    @pl.when(hi == 0)
    def _():
        acc_ref[...] = jnp.zeros_like(acc_ref)

    acc_ref[...] += jnp.sum(x_ref[...], axis=1, dtype=jnp.float32)   # (1, C)

    @pl.when(hi == pl.num_programs(1) - 1)
    def _():
        pooled = acc_ref[...] * inv_hw                               # (1, C)
        h = jnp.dot(pooled, w1t_ref[...],
                    preferred_element_type=jnp.float32) + b1_ref[...]
        h = jnp.maximum(h, 0.0)
        s = jnp.dot(h, w2t_ref[...],
                    preferred_element_type=jnp.float32) + b2_ref[...]
        s_ref[...] = jax.nn.sigmoid(s)[:, None, :]                   # (1, 1, C)


def _se_scale_kernel(x_ref, s_ref, o_ref):
    x = x_ref[...]                                                   # (1, hw, C)
    o_ref[...] = x * s_ref[...].astype(x.dtype)                      # (1, 1, C) bcast


def _pick_hw_block(hw, max_rows):
    """Largest divisor of hw <= max_rows, preferring multiples of 8 (or hw)."""
    best_aligned, best_any = None, None
    for d in range(1, hw + 1):
        if hw % d != 0 or d > max_rows:
            continue
        best_any = d
        if d % 8 == 0 or d == hw:
            best_aligned = d
    return best_aligned or best_any or 1


# ----------------------------------------------------------------------------
# Drivers
# ----------------------------------------------------------------------------
def se_nhwc_flat(x_flat, w1t, b1_row, w2t, b2_row, *, batch_block=None,
                 hw_block=None, force_split=False):
    """x_flat: (N, HW, C); w1t: (C, mid); b1_row: (1, mid); w2t: (mid, C); b2_row: (1, C)."""
    N, HW, C = x_flat.shape
    mid = w1t.shape[1]
    item = x_flat.dtype.itemsize

    budget = _vmem_budget_bytes()
    slack = 2 * _MIB
    param_bytes = 2 * 4 * (C * mid + mid + mid * C + C)   # double-buffered params
    row_bytes = HW * C * item

    if batch_block is None:
        # 2 buffers each for the x and out blocks must fit the budget.
        fit_rows = (budget - param_bytes - slack) // (4 * row_bytes)
        target_rows = max(1, (8 * _MIB) // row_bytes)      # ~8 MiB block target
        upper = min(fit_rows, target_rows, N)
        if N >= 2:
            upper = min(upper, max(1, N // 2))             # >= 2 steps (v7x 2 TCs)
        batch_block = 0
        for b in range(int(upper), 0, -1):
            if N % b == 0:
                batch_block = b
                break
    else:
        assert N % batch_block == 0, "batch_block must divide N"
    if force_split:
        batch_block = 0

    if batch_block >= 1:
        # ------------------------- fused single-kernel path -------------------
        grid = (N // batch_block,)
        return pl.pallas_call(
            _se_fused_kernel,
            out_shape=jax.ShapeDtypeStruct((N, HW, C), x_flat.dtype),
            grid_spec=pltpu.PrefetchScalarGridSpec(
                num_scalar_prefetch=0,
                grid=grid,
                in_specs=[
                    pl.BlockSpec((batch_block, HW, C), lambda n: (n, 0, 0)),
                    pl.BlockSpec((C, mid), lambda n: (0, 0)),
                    pl.BlockSpec((1, mid), lambda n: (0, 0)),
                    pl.BlockSpec((mid, C), lambda n: (0, 0)),
                    pl.BlockSpec((1, C), lambda n: (0, 0)),
                ],
                out_specs=pl.BlockSpec((batch_block, HW, C),
                                       lambda n: (n, 0, 0)),
            ),
            compiler_params=pltpu.CompilerParams(
                dimension_semantics=("parallel",),
                vmem_limit_bytes=int(budget),
            ),
        )(x_flat, w1t, b1_row, w2t, b2_row)

    # ------------------------- split (gate + scale) path ----------------------
    if hw_block is None:
        max_rows = max(1, (budget - param_bytes - slack) // (4 * C * item))
        hw_block = _pick_hw_block(HW, max_rows)
    assert HW % hw_block == 0, "hw_block must divide H*W"

    s = pl.pallas_call(
        functools.partial(_se_gate_kernel, inv_hw=1.0 / float(HW)),
        out_shape=jax.ShapeDtypeStruct((N, 1, C), jnp.float32),
        grid_spec=pltpu.PrefetchScalarGridSpec(
            num_scalar_prefetch=0,
            grid=(N, HW // hw_block),
            in_specs=[
                pl.BlockSpec((1, hw_block, C), lambda n, h: (n, h, 0)),
                pl.BlockSpec((C, mid), lambda n, h: (0, 0)),
                pl.BlockSpec((1, mid), lambda n, h: (0, 0)),
                pl.BlockSpec((mid, C), lambda n, h: (0, 0)),
                pl.BlockSpec((1, C), lambda n, h: (0, 0)),
            ],
            out_specs=pl.BlockSpec((1, 1, C), lambda n, h: (n, 0, 0)),
            scratch_shapes=[pltpu.VMEM((1, C), jnp.float32)],
        ),
        compiler_params=pltpu.CompilerParams(
            dimension_semantics=("parallel", "arbitrary"),
            vmem_limit_bytes=int(budget),
        ),
    )(x_flat, w1t, b1_row, w2t, b2_row)

    return pl.pallas_call(
        _se_scale_kernel,
        out_shape=jax.ShapeDtypeStruct((N, HW, C), x_flat.dtype),
        grid_spec=pltpu.PrefetchScalarGridSpec(
            num_scalar_prefetch=0,
            grid=(N, HW // hw_block),
            in_specs=[
                pl.BlockSpec((1, hw_block, C), lambda n, h: (n, h, 0)),
                pl.BlockSpec((1, 1, C), lambda n, h: (n, 0, 0)),
            ],
            out_specs=pl.BlockSpec((1, hw_block, C), lambda n, h: (n, h, 0)),
        ),
        compiler_params=pltpu.CompilerParams(
            dimension_semantics=("parallel", "parallel"),
            vmem_limit_bytes=int(budget),
        ),
    )(x_flat, s)


def se_nhwc(x_nhwc, w1, b1, w2, b2, **kw):
    """Primary API: x in NHWC -> channels already lane-dense, no transposes."""
    N, H, W, C = x_nhwc.shape
    mid = w1.shape[0]
    out = se_nhwc_flat(x_nhwc.reshape(N, H * W, C),
                       jnp.transpose(w1), b1.reshape(1, mid),
                       jnp.transpose(w2), b2.reshape(1, C), **kw)
    return out.reshape(N, H, W, C)


def se_module(x, w1, b1, w2, b2, **kw):
    """SEModule forward for NCHW x (matches the PyTorch module).

    x: (N, C, H, W); w1: (mid, C), b1: (mid,); w2: (C, mid), b2: (C,).
    The NCHW<->NHWC transposes here each add a full read+write of x in XLA,
    roughly tripling HBM traffic of this bandwidth-bound op.  Prefer se_nhwc /
    se_nhwc_flat in NHWC pipelines, or fuse SE into the producing conv epilogue.
    # TODO(synk): NCHW-native variant doing the layout swap in-kernel.
    """
    x_nhwc = jnp.transpose(x, (0, 2, 3, 1))
    out = se_nhwc(x_nhwc, w1, b1, w2, b2, **kw)
    return jnp.transpose(out, (0, 3, 1, 2))


def se_reference(x, w1, b1, w2, b2):
    pooled = jnp.mean(x, axis=(2, 3))                       # (N, C)
    h = jnp.maximum(pooled @ w1.T + b1, 0.0)                # (N, mid)
    s = jax.nn.sigmoid(h @ w2.T + b2)                       # (N, C)
    return x * s[:, :, None, None]


if __name__ == "__main__":
    # SEModule(inplanes=128, ratio=16): C=128 keeps the lane axis fully dense;
    # N=4 gives an auto batch_block of 2 -> 2-step parallel grid.
    N, C, H, W = 4, 128, 8, 8
    ratio = 16
    mid = C // ratio

    key = jax.random.PRNGKey(0)
    kx, k1, k2, k3, k4 = jax.random.split(key, 5)

    x = jax.random.normal(kx, (N, C, H, W), dtype=jnp.float32)
    w1 = 0.1 * jax.random.normal(k1, (mid, C), dtype=jnp.float32)
    b1 = 0.1 * jax.random.normal(k2, (mid,), dtype=jnp.float32)
    w2 = 0.1 * jax.random.normal(k3, (C, mid), dtype=jnp.float32)
    b2 = 0.1 * jax.random.normal(k4, (C,), dtype=jnp.float32)

    ref = se_reference(x, w1, b1, w2, b2)

    # Fused path (auto batch_block from the VMEM budget).
    out = jax.block_until_ready(se_module(x, w1, b1, w2, b2))
    assert out.shape == (N, C, H, W)
    assert jnp.allclose(out, ref, atol=1e-5, rtol=1e-5), "fused path mismatch"

    # Large-activation fallback (gate kernel + tiled scale kernel), forced here
    # at small shapes to verify correctness of the split path.
    out_split = jax.block_until_ready(
        se_module(x, w1, b1, w2, b2, force_split=True, hw_block=32))
    assert jnp.allclose(out_split, ref, atol=1e-5, rtol=1e-5), "split path mismatch"

    print("KERNEL_OK")
</pallas_src>

<mosaic_0001>
module attributes {stable_mosaic.version = 11 : i64} {
  func.func @_se_fused_kernel(%arg0: i32, %arg1: memref<2x64x128xf32, #tpu.memory_space<vmem>>, %arg2: memref<128x8xf32, #tpu.memory_space<vmem>>, %arg3: memref<1x8xf32, #tpu.memory_space<vmem>>, %arg4: memref<8x128xf32, #tpu.memory_space<vmem>>, %arg5: memref<1x128xf32, #tpu.memory_space<vmem>>, %arg6: memref<2x64x128xf32, #tpu.memory_space<vmem>>) attributes {dimension_semantics = [#tpu.dimension_semantics<parallel>], iteration_bounds = array<i64: 2>, scalar_prefetch = 0 : i64, scratch_operands = 0 : i64, tpu.core_type = #tpu.core_type<tc>, window_params = [{transform_indices = @transform_0, window_bounds = array<i64: 2, 64, 128>}, {pipeline_mode = #tpu.pipeline_mode<synchronous>, transform_indices = @transform_1, window_bounds = array<i64: 128, 8>}, {pipeline_mode = #tpu.pipeline_mode<synchronous>, transform_indices = @transform_2, window_bounds = array<i64: 1, 8>}, {pipeline_mode = #tpu.pipeline_mode<synchronous>, transform_indices = @transform_3, window_bounds = array<i64: 8, 128>}, {pipeline_mode = #tpu.pipeline_mode<synchronous>, transform_indices = @transform_4, window_bounds = array<i64: 1, 128>}, {transform_indices = @transform_5, window_bounds = array<i64: 2, 64, 128>}]} {
    %c0 = arith.constant 0 : index
    %c0_0 = arith.constant 0 : index
    %c0_1 = arith.constant 0 : index
    %0 = vector.load %arg1[%c0, %c0_0, %c0_1] : memref<2x64x128xf32, #tpu.memory_space<vmem>>, vector<2x64x128xf32>
    %cst = arith.constant dense<0.000000e+00> : vector<2x128xf32>
    %1 = vector.multi_reduction <add>, %0, %cst [1] : vector<2x64x128xf32> to vector<2x128xf32>
    %cst_2 = arith.constant 6.400000e+01 : f32
    %2 = vector.broadcast %cst_2 : f32 to vector<2x128xf32>
    %3 = arith.divf %1, %2 : vector<2x128xf32>
    %c0_3 = arith.constant 0 : index
    %c0_4 = arith.constant 0 : index
    %4 = vector.load %arg2[%c0_3, %c0_4] : memref<128x8xf32, #tpu.memory_space<vmem>>, vector<128x8xf32>
    %cst_5 = arith.constant dense<0.000000e+00> : vector<2x8xf32>
    %5 = tpu.matmul %3, %4, %cst_5 {dimension_numbers = #tpu.dot_dimension_numbers<[1], [0], [0], [1], [0, 0, 1, 1], [], []>} : vector<2x128xf32>, vector<128x8xf32>, vector<2x8xf32> -> vector<2x8xf32>
    %c0_6 = arith.constant 0 : index
    %c0_7 = arith.constant 0 : index
    %6 = vector.load %arg3[%c0_6, %c0_7] : memref<1x8xf32, #tpu.memory_space<vmem>>, vector<1x8xf32>
    %7 = vector.broadcast %6 : vector<1x8xf32> to vector<2x8xf32>
    %8 = arith.addf %5, %7 : vector<2x8xf32>
    %cst_8 = arith.constant 0.000000e+00 : f32
    %9 = vector.broadcast %cst_8 : f32 to vector<2x8xf32>
    %10 = arith.maximumf %8, %9 : vector<2x8xf32>
    %c0_9 = arith.constant 0 : index
    %c0_10 = arith.constant 0 : index
    %11 = vector.load %arg4[%c0_9, %c0_10] : memref<8x128xf32, #tpu.memory_space<vmem>>, vector<8x128xf32>
    %cst_11 = arith.constant dense<0.000000e+00> : vector<2x128xf32>
    %12 = tpu.matmul %10, %11, %cst_11 {dimension_numbers = #tpu.dot_dimension_numbers<[1], [0], [0], [1], [0, 0, 1, 1], [], []>} : vector<2x8xf32>, vector<8x128xf32>, vector<2x128xf32> -> vector<2x128xf32>
    %c0_12 = arith.constant 0 : index
    %c0_13 = arith.constant 0 : index
    %13 = vector.load %arg5[%c0_12, %c0_13] : memref<1x128xf32, #tpu.memory_space<vmem>>, vector<1x128xf32>
    %14 = vector.broadcast %13 : vector<1x128xf32> to vector<2x128xf32>
    %15 = arith.addf %12, %14 : vector<2x128xf32>
    %16 = arith.negf %15 : vector<2x128xf32>
    %17 = math.exp %16 : vector<2x128xf32>
    %cst_14 = arith.constant 1.000000e+00 : f32
    %18 = vector.broadcast %cst_14 : f32 to vector<2x128xf32>
    %19 = arith.addf %18, %17 : vector<2x128xf32>
    %20 = arith.divf %18, %19 : vector<2x128xf32>
    %21 = vector.shape_cast %20 : vector<2x128xf32> to vector<2x1x128xf32>
    %22 = vector.broadcast %21 : vector<2x1x128xf32> to vector<2x64x128xf32>
    %23 = arith.mulf %0, %22 : vector<2x64x128xf32>
    %c0_15 = arith.constant 0 : index
    %c0_16 = arith.constant 0 : index
    %c0_17 = arith.constant 0 : index
    %24 = vector.load %arg6[%c0_15, %c0_16, %c0_17] : memref<2x64x128xf32, #tpu.memory_space<vmem>>, vector<2x64x128xf32>
    tpu.vector_store %arg6[%c0_15, %c0_16, %c0_17], %23 {strides = array<i32>} : memref<2x64x128xf32, #tpu.memory_space<vmem>>, vector<2x64x128xf32>,
    return
  }
  func.func @transform_0(%arg0: i32) -> (i32, i32, i32) {
    %c0_i32 = arith.constant 0 : i32
    %c0_i32_0 = arith.constant 0 : i32
    %c0_i32_1 = arith.constant 0 : i32
    return %arg0, %c0_i32, %c0_i32_0 : i32, i32, i32
  }
  func.func @transform_1(%arg0: i32) -> (i32, i32) {
    %c0_i32 = arith.constant 0 : i32
    %c0_i32_0 = arith.constant 0 : i32
    %c0_i32_1 = arith.constant 0 : i32
    return %c0_i32, %c0_i32_0 : i32, i32
  }
  func.func @transform_2(%arg0: i32) -> (i32, i32) {
    %c0_i32 = arith.constant 0 : i32
    %c0_i32_0 = arith.constant 0 : i32
    %c0_i32_1 = arith.constant 0 : i32
    return %c0_i32, %c0_i32_0 : i32, i32
  }
  func.func @transform_3(%arg0: i32) -> (i32, i32) {
    %c0_i32 = arith.constant 0 : i32
    %c0_i32_0 = arith.constant 0 : i32
    %c0_i32_1 = arith.constant 0 : i32
    return %c0_i32, %c0_i32_0 : i32, i32
  }
  func.func @transform_4(%arg0: i32) -> (i32, i32) {
    %c0_i32 = arith.constant 0 : i32
    %c0_i32_0 = arith.constant 0 : i32
    %c0_i32_1 = arith.constant 0 : i32
    return %c0_i32, %c0_i32_0 : i32, i32
  }
  func.func @transform_5(%arg0: i32) -> (i32, i32, i32) {
    %c0_i32 = arith.constant 0 : i32
    %c0_i32_0 = arith.constant 0 : i32
    %c0_i32_1 = arith.constant 0 : i32
    return %arg0, %c0_i32, %c0_i32_0 : i32, i32, i32
  }
}

</mosaic_0001>

<bundles_post_ra>
// kernel: tpu_custom_call.1
= control target key start
LH: loop header
LB: loop body
LE: loop exit
PB: predicated region body
PF: predicated region fallthrough
CT: control target
= control target key end

     0   :  { %10 = vsyncpa [#allocation3], 0  ;;  %s1239_s0 = inlined_call_operand.hbm [shape: f32[4,64,128], index: 0, kind: input, shape index: {}]   ;;  %s1240_s1 = inlined_call_operand.vmem [shape: f32[128,8], index: 1, kind: input, shape index: {}]   ;;  %s1241_s2 = inlined_call_operand.vmem [shape: f32[1,8], index: 2, kind: input, shape index: {}]   ;;  %s1242_s3 = inlined_call_operand.vmem [shape: f32[8,128], index: 3, kind: input, shape index: {}]   ;;  %s1243_s4 = inlined_call_operand.vmem [shape: f32[1,128], index: 4, kind: input, shape index: {}]   ;;  %s1244_s5 = inlined_call_operand.hbm [shape: f32[4,64,128], index: 5, kind: output, shape index: {}]  }
   0x1   :  { %12 = vsyncpa [#allocation3 + $0x1], 0 }
   0x2   :  { %13 = vsyncpa [#allocation4], 0 }
   0x3   :  { %15 = vsyncpa [#allocation4 + $0x1], 0  ;;  %s904_s18 = smov 0   ;;  %s906_s19 = smov 0  }
   0x4   :  { %s908_s20 = smov 0   ;;  %s910_s21 = smov 0  }
   0x5 LB: > { %s925_s22 = sadd.s32 4294967295, %s863_s21   ;;  %s631_s23 = sadd.s32 4294967294, %s863_s21   ;;  %s863_s21 = sphi %s910_s21, %s1259_s21   ;;  %s859_s20 = sphi %s908_s20, %s1258_s20   ;;  %s855_s19 = sphi %s906_s19, %s1257_s19   ;;  %s851_s18 = sphi %s904_s18, %s1256_s18  }
   0x6   : > { %s929_s24 = sadd.s32 1, %s863_s21   ;;  %s28_s25 = sadd.s32 1, %s859_s20 }
   0x7   : > { %s25_s26 = ssub.s32 %s863_s21, %s929_s24  ;;  %p35_p0 = scmp.ne.s32.totalorder %s859_s20, %s855_s19 }
   0x8   : > { %p26_p1 = scmp.eq.s32.totalorder %s25_s26, 0  ;;  %p36_p2 = scmp.eq.s32.totalorder %s863_s21, 0 }
   0x9   : > { %p41_p3 = scmp.ne.s32.totalorder %s855_s19, %s851_s18  ;;  %p42_p4 = scmp.eq.s32.totalorder %s925_s22, 0 }
   0xa   : > { %s941_s27 = scalar_select %p26_p1, %s859_s20, %s28_s25  }
   0xb   : > { %p943_p5 = por %p36_p2, %p35_p0  ;;  %p947_p6 = por %p42_p4, %p41_p3 }
   0xc   : > { %p149_p7 = scmp.eq.s32.totalorder %s925_s22, 1  ;;  %p155_p8 = scmp.eq.s32.totalorder %s631_s23, 1 }
   0xd   : > { %s1248_s29 = scalar_select %p947_p6, 1, 0 }
   0xe   : > { %p726_p10 = scmp.lt.s32.totalorder %s863_s21, 2  ;;  %p954_p11 = por %p149_p7, %p35_p0 }
   0xf   : > { %p958_p12 = por %p155_p8, %p41_p3  ;;  %s187_s7 = sand.u32 1, %s859_s20  }
  0x10   : > { %s1249_s30 = scalar_select %p954_p11, 1, 0 }
  0x11   : > { %s1250_s6 = scalar_select %p958_p12, 1, 0 }
  0x12   : > { %s652_s8 = sshll.u32 %s863_s21, 11  ;;  %s634_s9 = sshll.u32 %s187_s7, 7 }
  0x13   : > { %s967_s12 = scalar_lea.hbm %s1239_s0, %s652_s8  ;;  %s191_s13 = scalar_lea.vmem [#allocation2], %s634_s9 }
  0x14   : > { %s199_s14 = sshll.u32 %s191_s13, 4  ;;  %p971_p13 = pnand %p726_p10, %p943_p5  ;;  %s975_s14 = int_to_ptr.vmem [resolvable:$true] %s199_s14 }
  0x15   : > { %s977_s16 = scalar_lea.sflag [#allocation3], %s187_s7  ;;  %s771_s17 = scalar_lea.hbm %s967_s12, 2048 }
  0x16   : > { %p772_p0 = scmp.ne.s32.totalorder %s967_s12, %s771_s17  ;;  %p773_p1 = pneg %p971_p13 }
  0x17   : > { %s776_s26 = scalar_lea.hbm %s1239_s0, 4096  ;;  %p777_p4 = scmp.lt.s32.totalorder %s967_s12, %s1239_s0 }
  0x18   : > { %p774_p2 = pnand %p773_p1, %p772_p0  ;;  %p778_p5 = scmp.lt.s32.totalorder %s776_s26, %s771_s17 }
  0x1a   : > { %p775_p3 = pneg %p774_p2  ;;  %p779_p7 = por %p778_p5, %p777_p4 }
  0x1c   : > { %p780_p8 = pnand %p779_p7, %p775_p3 }
  0x1e   : > { %783 = shalt.err (!%p780_p8)
}
  0x1f   : > { %s784_s7 = scalar_lea.vmem %s975_s14, 2048  ;;  %s865_s9 = smov [#allocation2]  }
  0x20   : > { %p785_p10 = scmp.ne.s32.totalorder %s975_s14, %s784_s7  ;;  %s789_s10 = sshll.u32 %s865_s9, 4  ;;  %s790_s10 = int_to_ptr.vmem [resolvable:$false] %s789_s10 }
  0x21   : > { %s791_s11 = scalar_lea.vmem %s790_s10, 4096  ;;  %p792_p2 = scmp.lt.s32.totalorder %s975_s14, %s790_s10 }
  0x22   : > { %p787_p9 = pnand %p785_p10, %p773_p1  ;;  %p793_p12 = scmp.lt.s32.totalorder %s791_s11, %s784_s7 }
  0x24   : > { %p788_p0 = pneg %p787_p9  ;;  %p794_p11 = por %p793_p12, %p792_p2 }
  0x26   : > { %p795_p6 = pnand %p794_p11, %p788_p0 }
  0x28   : > { %798 = shalt.err (!%p795_p6)
}
  0x29   : > { %s866_s13 = smov 128   ;;  %s867_s17 = smov 8  }
  0x2a   : > { %721 = dma.hbm_to_vmem [thread:$0]  (!%p971_p13), %s967_s12, 2048, %s975_s14, %s977_s16, %s866_s13, %s866_s13, %s867_s17  }
  0x2b   : > { %p638_p9 = scmp.ge.s32.totalorder %s863_s21, 1  ;;  %p207_p1 = scmp.lt.s32.totalorder %s863_s21, 3 }
  0x2d   : > { %p208_p3 = pnand %p638_p9, %p207_p1 }
  0x2e   : > { %s1001_s23 = sand.u32 (!%p208_p3), 1, %s855_s19   ;;  %p1252_p6 = scmp.ne.s32.totalorder (!%p208_p3), %s1248_s29, 0 }
  0x2f   : > { %211 = sbr.rel (%p208_p3) target bundleno = 541 (0x21d), region = 40  ;;  %s639_s25 = sshll.u32 (!%p208_p3), %s1001_s23, 7 }
  0x30   : > { %s214_s26 = scalar_lea.sflag (!%p208_p3), [#allocation3], %s1001_s23  ;;  %s1007_s28 = scalar_lea.vmem (!%p208_p3), [#allocation2], %s639_s25 }
  0x34   : > { %842 = dma.done.wait (%p1252_p6), %s214_s26, 2048  }
  0x35   : > { %844 = vsyncadd (%p1252_p6), %s214_s26, 4294965248  ;;  %v868_v0 = vmov 0.0   ;;  %vm869_vm0 = vmmov 0   ;;  %v306_v1 = vld [vmem:[%s1240_s1 + $0x78] sm:$0xff]  ;;  %v305_v2 = vld [vmem:[%s1240_s1 + $0x70] sm:$0xff]  ;;  %vm316_vm1 = vcmask 1041409  }
  0x36   : > { %674 = vmatprep.subr.mxu0 %v868_v0  ;;  %706 = vmatprep.mubr.msk.f32.mxu0 %vm869_vm0, %v868_v0  ;;  %v304_v3 = vld [vmem:[%s1240_s1 + $0x68] sm:$0xff]  ;;  %v303_v4 = vld [vmem:[%s1240_s1 + $0x60] sm:$0xff]  ;;  %v302_v7 = vld [vmem:[%s1240_s1 + $0x58] sm:$0xff]  ;;  %vm398_vm2 = vcmask 64512   ;;  %s654_s17 = sshll.u32 %s925_s22, 11  ;;  %s544_s14 = scalar_lea.sflag [#allocation4], %s1001_s23 }
  0x37   : > { %709 = vmatprep.subr.mxu1 %v868_v0  ;;  %711 = vmatprep.mubr.msk.f32.mxu1 %vm869_vm0, %v868_v0  ;;  %v1032_v5 = vld [vmem:[%s1007_s28] sm:$0xff]  ;;  %v1035_v6 = vld [vmem:[%s1007_s28 + $0x8] sm:$0xff]  ;;  %v1042_v8 = vld [vmem:[%s1007_s28 + $0x10] sm:$0xff]  ;;  %s1184_s12 = scalar_lea.hbm %s1244_s5, %s654_s17  ;;  %p1253_p12 = scmp.ne.s32.totalorder %s1249_s30, 0 }
  0x38   : > { %675 = vmatpush3.msra.mxu0 %v306_v1  ;;  %v262_v9 = vadd.f32 %v1035_v6, %v1032_v5  ;;  %v301_v10 = vld [vmem:[%s1240_s1 + $0x50] sm:$0xff]  ;;  %v1050_v11 = vld [vmem:[%s1007_s28 + $0x18] sm:$0xff]  ;;  %v1054_v12 = vld [vmem:[%s1007_s28 + $0x40] sm:$0xff]  ;;  %s871_s29 = smov [#allocation5]  }
  0x39   : > { %676 = vmatprep.subr.mxu0 %v868_v0  ;;  %v1057_v13 = vld [vmem:[%s1007_s28 + $0x48] sm:$0xff]  ;;  %v1060_v14 = vld [vmem:[%s1007_s28 + $0x50] sm:$0xff]  ;;  %v1064_v16 = vld [vmem:[%s1007_s28 + $0x20] sm:$0xff]  ;;  %s803_s16 = sshll.u32 %s871_s29, 4  ;;  %s804_s16 = int_to_ptr.vmem [resolvable:$false] %s803_s16 }
  0x3a   : > { %677 = vmatpush3.msra.mxu0 %v305_v2  ;;  %v263_v15 = vadd.f32 %v262_v9, %v1042_v8  ;;  %v275_v17 = vadd.f32 %v1057_v13, %v1054_v12  ;;  %v300_v18 = vld [vmem:[%s1240_s1 + $0x48] sm:$0xff]  ;;  %v1073_v19 = vld [vmem:[%s1007_s28 + $0x58] sm:$0xff]  ;;  %v299_v23 = vld [vmem:[%s1240_s1 + $0x40] sm:$0xff]  ;;  %s805_s8 = scalar_lea.vmem %s804_s16, 4096 }
  0x3b   : > { %678 = vmatprep.subr.mxu0 %v868_v0  ;;  %v1077_v21 = vld [vmem:[%s1007_s28 + $0x28] sm:$0xff]  ;;  %v1085_v24 = vld [vmem:[%s1007_s28 + $0x60] sm:$0xff]  ;;  %v1089_v26 = vld [vmem:[%s1007_s28 + $0x30] sm:$0xff] }
  0x3c   : > { %679 = vmatpush3.msra.mxu0 %v304_v3  ;;  %v264_v20 = vadd.f32 %v263_v15, %v1050_v11  ;;  %v276_v22 = vadd.f32 %v275_v17, %v1060_v14  ;;  %v298_v28 = vld [vmem:[%s1240_s1 + $0x38] sm:$0xff]  ;;  %v1097_v29 = vld [vmem:[%s1007_s28 + $0x68] sm:$0xff]  ;;  %v297_v33 = vld [vmem:[%s1240_s1 + $0x30] sm:$0xff] }
  0x3d   : > { %680 = vmatprep.subr.mxu0 %v868_v0  ;;  %v1101_v31 = vld [vmem:[%s1007_s28 + $0x38] sm:$0xff]  ;;  %v1109_v34 = vld [vmem:[%s1007_s28 + $0x70] sm:$0xff]  ;;  %v296_v37 = vld [vmem:[%s1240_s1 + $0x28] sm:$0xff] }
  0x3e   : > { %681 = vmatpush3.msra.mxu0 %v303_v4  ;;  %v265_v25 = vadd.f32 %v264_v20, %v1064_v16  ;;  %v277_v27 = vadd.f32 %v276_v22, %v1073_v19  ;;  %v1118_v38 = vld [vmem:[%s1007_s28 + $0x78] sm:$0xff]  ;;  %v295_v41 = vld [vmem:[%s1240_s1 + $0x20] sm:$0xff]  ;;  %v293_v47 = vld [vmem:[%s1240_s1 + $0x10] sm:$0xff]  ;;  %v870_v20 = vmov 1966171168   ;;  %s1159_s28 = scalar_lea.vmem [#allocation5], %s639_s25 }
  0x3f   : > { %682 = vmatprep.subr.mxu0 %v868_v0  ;;  %v294_v44 = vld [vmem:[%s1240_s1 + $0x18] sm:$0xff]  ;;  %v292_v50 = vld [vmem:[%s1240_s1 + $0x8] sm:$0xff]  ;;  %v291_v53 = vld [vmem:[%s1240_s1] sm:$0xff]  ;;  %v480_v22 = vunpack.c.l.s4 %v870_v20  ;;  %s558_s26 = sshll.u32 %s1159_s28, 4  ;;  %s1186_s26 = int_to_ptr.vmem [resolvable:$true] %s558_s26 }
  0x40   : > { %683 = vmatpush3.msra.mxu0 %v302_v7  ;;  %v266_v30 = vadd.f32 %v265_v25, %v1077_v21  ;;  %v278_v32 = vadd.f32 %v277_v27, %v1085_v24  ;;  %v390_v62 = vld [vmem:[%s1242_s3] sm:$0xff]  ;;  %s799_s15 = scalar_lea.vmem %s1186_s26, 2048  ;;  %p806_p5 = scmp.lt.s32.totalorder %s1186_s26, %s804_s16 }
  0x41   : > { %684 = vmatprep.subr.mxu0 %v868_v0  ;;  %710 = vmatpush3.msra.mxu1 %v390_v62  ;;  %v641_v63 = vld [vmem:[%s1241_s2] ss:$0 sm:$0xff]  ;;  %v481_v25 = vunpack.c.0.s8 %v480_v22  ;;  %p800_p11 = scmp.ne.s32.totalorder %s1186_s26, %s799_s15  ;;  %p807_p7 = scmp.lt.s32.totalorder %s805_s8, %s799_s15 }
  0x42   : > { %685 = vmatpush3.msra.mxu0 %v301_v10  ;;  %v267_v35 = vadd.f32 %v266_v30, %v1089_v26  ;;  %v279_v36 = vadd.f32 %v278_v32, %v1097_v29  ;;  %v642_v4 = vld [vmem:[%s1243_s4] ss:$0 sm:$0xff] }
  0x43   : > { %686 = vmatprep.subr.mxu0 %v868_v0  ;;  %p801_p13 = pnand %p800_p11, %p1253_p12  ;;  %p808_p8 = por %p807_p7, %p806_p5 }
  0x44   : > { %687 = vmatpush3.msra.mxu0 %v300_v18  ;;  %v268_v39 = vadd.f32 %v267_v35, %v1101_v31  ;;  %v280_v40 = vadd.f32 %v279_v36, %v1109_v34 }
  0x45   : > { %688 = vmatprep.subr.mxu0 %v868_v0  ;;  %p802_p4 = pneg %p801_p13 }
  0x46   : > { %689 = vmatpush3.msra.mxu0 %v299_v23  ;;  %v269_v42 = vrot.slane %v268_v39, 4  ;;  %v281_v43 = vadd.f32 %v280_v40, %v1118_v38  ;;  %v482_v23 = vlaneseq }
  0x47   : > { %690 = vmatprep.subr.mxu0 %v868_v0  ;;  %p809_p10 = pnand %p808_p8, %p802_p4 }
  0x48   : > { %691 = vmatpush3.msra.mxu0 %v298_v28  ;;  %v270_v45 = vadd.f32 %v269_v42, %v268_v39  ;;  %v282_v46 = vrot.slane %v281_v43, 4  ;;  %v483_v27 = vshrl.u32 %v482_v23, 7 }
  0x49   : > { %692 = vmatprep.subr.mxu0 %v868_v0 }
  0x4a   : > { %693 = vmatpush3.msra.mxu0 %v297_v33  ;;  %v271_v48 = vrot.slane %v270_v45, 2  ;;  %v283_v49 = vadd.f32 %v282_v46, %v281_v43  ;;  %v484_v28 = vsub.s32 %v481_v25, %v483_v27  ;;  %v503_v33 = vsub.s32 0, %v483_v27 }
  0x4b   : > { %694 = vmatprep.subr.mxu0 %v868_v0 }
  0x4c   : > { %695 = vmatpush3.msra.mxu0 %v296_v37  ;;  %v272_v51 = vadd.f32 %v271_v48, %v270_v45  ;;  %v284_v52 = vrot.slane %v283_v49, 2 }
  0x4d   : > { %696 = vmatprep.subr.mxu0 %v868_v0 }
  0x4e   : > { %697 = vmatpush3.msra.mxu0 %v295_v41  ;;  %v273_v54 = vrot.slane %v272_v51, 1  ;;  %v285_v55 = vadd.f32 %v284_v52, %v283_v49 }
  0x4f   : > { %698 = vmatprep.subr.mxu0 %v868_v0 }
  0x50   : > { %699 = vmatpush3.msra.mxu0 %v294_v44  ;;  %v274_v56 = vadd.f32 %v273_v54, %v272_v51  ;;  %v286_v57 = vrot.slane %v285_v55, 1 }
  0x51   : > { %700 = vmatprep.subr.mxu0 %v868_v0 }
  0x52   : > { %701 = vmatpush3.msra.mxu0 %v293_v47  ;;  %v287_v58 = vadd.f32 %v286_v57, %v285_v55  ;;  %v289_v59 = vmul.f32 0.015625, %v274_v56 }
  0x53   : > { %702 = vmatprep.subr.mxu0 %v868_v0 }
  0x54   : > { %703 = vmatpush3.msra.mxu0 %v292_v50  ;;  %v290_v60 = vmul.f32 0.015625, %v287_v58 }
  0x55   : > { %704 = vmatprep.subr.mxu0 %v868_v0 }
  0x56   : > { %705 = vmatpush3.msra.mxu0 %v291_v53  ;;  %v317_v61 = vsel %vm316_vm1, %v290_v60, %v289_v59 }
  0x57   : > { %707 = vmatmul.mubr.f32.vlgmr.msra.gmra.mxu0 %v317_v61 }
 0x117   : > { %v385_v1 = vpop.f32.mrf.mxu0 }
 0x118   : > { %v386_v0 = vadd.f32 %v641_v63, %v385_v1 }
 0x119   : > { %v708_v2 = vpop.f32.mrf.mxu0 }
 0x11a   : > { %v389_v3 = vmax.f32 %v386_v0, 0.0 }
 0x11c   : > { %712 = vmatmul.mubr.msk.f32.vlgmr.msra.gmra.mxu1 %vm398_vm2, %v389_v3 }
 0x1dc   : > { %v468_v7 = vpop.f32.mrf.mxu1 }
 0x1dd   : > { %v469_v9 = vadd.f32 %v642_v4, %v468_v7 }
 0x1de   : > { %v713_v10 = vpop.f32.mrf.mxu1 }
 0x1df   : > { %v644_v15 = vmul.f32 -1.442695, %v469_v9 }
 0x1e1   : > { %767 = vpow2.f32 %v644_v15 }
 0x1ee   : > { %v768_v17 = vpop.eup %767 }
 0x1ef   : > { %v475_v18 = vadd.f32 1.0, %v768_v17 }
 0x1f1   : > { %769 = vrcp.f32 %v475_v18 }
 0x1fe   : > { %v770_v30 = vpop.eup %769 }
 0x1ff   : > { %v485_v32 = vrot.slane %v770_v30, %v484_v28 }
 0x201   : > { %v486_v35 = vcombine.high %v485_v32, %v485_v32  ;;  %v493_v36 = vrot.slane %v485_v32, %v484_v28 }
 0x203   : > { %v500_v37 = vrot.slane %v486_v35, %v484_v28  ;;  %v504_v39 = vrot.slane %v493_v36, %v503_v33 }
 0x205   : > { %v508_v40 = vrot.slane %v500_v37, %v503_v33  ;;  %v511_v41 = vmul.f32 %v504_v39, %v1032_v5  ;;  %v512_v42 = vmul.f32 %v504_v39, %v1035_v6  ;;  %v513_v43 = vmul.f32 %v504_v39, %v1042_v8 }
 0x206   : > { %v514_v44 = vmul.f32 %v504_v39, %v1050_v11  ;;  %v515_v45 = vmul.f32 %v504_v39, %v1064_v16  ;;  %v516_v5 = vmul.f32 %v504_v39, %v1077_v21  ;;  %v517_v6 = vmul.f32 %v504_v39, %v1089_v26 }
 0x207   : > { %v518_v8 = vmul.f32 %v504_v39, %v1101_v31  ;;  %v519_v46 = vmul.f32 %v508_v40, %v1054_v12  ;;  %v520_v47 = vmul.f32 %v508_v40, %v1057_v13  ;;  %v521_v48 = vmul.f32 %v508_v40, %v1060_v14  ;;  %527 = vst [vmem:[%s1159_s28] sm:$0xff] %v511_v41 }
 0x208   : > { %528 = vst [vmem:[%s1159_s28 + $0x8] sm:$0xff] %v512_v42  ;;  %529 = vst [vmem:[%s1159_s28 + $0x10] sm:$0xff] %v513_v43  ;;  %v522_v11 = vmul.f32 %v508_v40, %v1073_v19  ;;  %v523_v16 = vmul.f32 %v508_v40, %v1085_v24  ;;  %v524_v12 = vmul.f32 %v508_v40, %v1097_v29 }
 0x209   : > { %v525_v13 = vmul.f32 %v508_v40, %v1109_v34  ;;  %530 = vst [vmem:[%s1159_s28 + $0x18] sm:$0xff] %v514_v44  ;;  %531 = vst [vmem:[%s1159_s28 + $0x20] sm:$0xff] %v515_v45  ;;  %v526_v14 = vmul.f32 %v508_v40, %v1118_v38 }
 0x20a   : > { %532 = vst [vmem:[%s1159_s28 + $0x28] sm:$0xff] %v516_v5  ;;  %533 = vst [vmem:[%s1159_s28 + $0x30] sm:$0xff] %v517_v6 }
 0x20b   : > { %534 = vst [vmem:[%s1159_s28 + $0x38] sm:$0xff] %v518_v8  ;;  %535 = vst [vmem:[%s1159_s28 + $0x40] sm:$0xff] %v519_v46 }
 0x20c   : > { %536 = vst [vmem:[%s1159_s28 + $0x48] sm:$0xff] %v520_v47  ;;  %537 = vst [vmem:[%s1159_s28 + $0x50] sm:$0xff] %v521_v48 }
 0x20d   : > { %538 = vst [vmem:[%s1159_s28 + $0x58] sm:$0xff] %v522_v11  ;;  %539 = vst [vmem:[%s1159_s28 + $0x60] sm:$0xff] %v523_v16 }
 0x20e   : > { %540 = vst [vmem:[%s1159_s28 + $0x68] sm:$0xff] %v524_v12  ;;  %541 = vst [vmem:[%s1159_s28 + $0x70] sm:$0xff] %v525_v13 }
 0x20f   : > { %542 = vst [vmem:[%s1159_s28 + $0x78] sm:$0xff] %v526_v14 }
 0x210   : > { %812 = shalt.err (!%p809_p10)
}
 0x211   : > { %s813_s7 = scalar_lea.hbm %s1184_s12, 2048  ;;  %s817_s11 = scalar_lea.hbm %s1244_s5, 4096 }
 0x212   : > { %p814_p0 = scmp.ne.s32.totalorder %s1184_s12, %s813_s7  ;;  %p818_p1 = scmp.lt.s32.totalorder %s1184_s12, %s1244_s5 }
 0x213   : > { %p819_p3 = scmp.lt.s32.totalorder %s817_s11, %s813_s7 }
 0x214   : > { %p815_p2 = pnand %p814_p0, %p1253_p12 }
 0x215   : > { %p820_p6 = por %p819_p3, %p818_p1 }
 0x216   : > { %p816_p9 = pneg %p815_p2 }
 0x218   : > { %p821_p11 = pnand %p820_p6, %p816_p9 }
 0x21a   : > { %824 = shalt.err (!%p821_p11)
}
 0x21b   : > { %s872_s28 = smov 128   ;;  %s873_s22 = smov 8  }
 0x21c   : > { %716 = dma.vmem_to_hbm [thread:$0]  (%p1253_p12), %s1186_s26, 2048, %s1184_s12, %s544_s14, %s872_s28, %s872_s28, %s873_s22  }
 0x21d PF: > { %s573_s25 = sand.u32 1, %s851_s18   ;;  %p1254_p13 = scmp.ne.s32.totalorder %s1250_s6, 0 }
 0x21e   : > { %p1255_p4 = scmp.ge.s32.totalorder %s863_s21, 2  ;;  %s574_s15 = scalar_lea.sflag [#allocation4], %s573_s25 }
 0x220   : > { %p723_p5 = pnand %p1255_p4, %p1254_p13 }
 0x222   : > { %p724_p7 = pneg %p723_p5 }
 0x224   : > { %846 = dma.done.wait (%p724_p7), %s574_s15, 2048  }
 0x225   : > { %848 = vsyncadd (%p724_p7), %s574_s15, 4294965248  ;;  %p18_p8 = scmp.ge.s32.totalorder %s929_s24, 4   ;;  %s1256_s18 = smov %s855_s19 }
 0x226   : > { %s1257_s19 = smov %s859_s20  ;;  %s1258_s20 = smov %s941_s27 }
 0x227   : > { %s1259_s21 = smov %s929_s24  ;;  %20 = sbr.rel (!%p18_p8) target bundleno = 5 (0x5), region = 85 }
 0x22c   :  { %579 = vsyncpa [#allocation3], 1 }
 0x22d   :  { %581 = vsyncpa [#allocation3 + $0x1], 1 }
 0x22e   :  { %582 = vsyncpa [#allocation4], 1 }
 0x22f   :  { %584 = vsyncpa [#allocation4 + $0x1], 1 }

</bundles_post_ra>
